<compile_context>
chip_gen: v7x
topology: tpu7x:2x2x1
jax: 0.10.0
libtpu: 0.0.40
codegen_flags: <defaults>
</compile_context>

<pallas_src>
import jax
import jax.numpy as jnp
from jax.experimental import pallas as pl
from jax.experimental.pallas import tpu as pltpu

# ---- module configuration (PyTorch defaults) --------------------------------
NUM_HEADS = 1
QK_SCALE_ARG = 1          # constructor qk_scale=1 is truthy -> scale == 1.0

# ---- small example shapes consistent with the forward ------------------------
B, N, NK, C, DV = 2, 8, 16, 32, 3
HEAD_DIM = C // NUM_HEADS
SCALE = float(QK_SCALE_ARG) if QK_SCALE_ARG else HEAD_DIM ** (-0.5)


# ---- the Pallas kernel --------------------------------------------------------
def geo_cross_attention_kernel(q_ref, k_ref, v_ref, o_ref):
    q = q_ref[...]            # (B, N, C)
    k = k_ref[...]            # (B, NK, C)
    v = v_ref[...]            # (B, NK, DV)

    # num_heads == 1: the head split/permute in the torch forward is a no-op, so
    # Q K^T is one batched MXU contraction (contract last dims, no XLU transpose).
    s = jnp.einsum("bnc,bmc->bnm", q, k,
                   preferred_element_type=jnp.float32)            # (B, N, NK)
    if SCALE != 1.0:                                              # traced out when == 1
        s = s * SCALE

    # numerically-stable softmax over keys; exact divide (costs nothing here and
    # keeps 1e-3 parity with torch).
    s = s - jnp.max(s, axis=-1, keepdims=True)
    p = jnp.exp(s)
    p = p / jnp.sum(p, axis=-1, keepdims=True)
    # attn_drop has p = 0.0 -> identity (module default)

    o = jnp.einsum("bnm,bmd->bnd", p, v,
                   preferred_element_type=jnp.float32)            # (B, N, DV)
    o_ref[...] = o.astype(o_ref.dtype)


# ---- wrapper -------------------------------------------------------------------
def geo_cross_attention(q, k, v):
    # Guard the specialized module defaults so the kernel never silently diverges.
    assert NUM_HEADS == 1, "kernel specializes the num_heads=1 module default"
    assert q.shape[-1] == C and k.shape[-1] == C and v.shape[-1] == DV
    assert q.shape[0] == k.shape[0] == v.shape[0] and k.shape[1] == v.shape[1]

    # Whole problem fits trivially in VMEM: no grid, no tiling, no pipelining —
    # one invocation, whole-array VMEM blocks, 4 DMAs total.
    return pl.pallas_call(
        geo_cross_attention_kernel,
        out_shape=jax.ShapeDtypeStruct((q.shape[0], q.shape[1], DV), q.dtype),
        in_specs=[
            pl.BlockSpec(memory_space=pltpu.MemorySpace.VMEM),   # q  (B, N, C)
            pl.BlockSpec(memory_space=pltpu.MemorySpace.VMEM),   # k  (B, NK, C)
            pl.BlockSpec(memory_space=pltpu.MemorySpace.VMEM),   # v  (B, NK, DV)
        ],
        out_specs=pl.BlockSpec(memory_space=pltpu.MemorySpace.VMEM),
    )(q, k, v)
    # TODO(synk): when q_map/k_map/x_map are not Identity (or this sits inside a
    # larger transformer block), fuse those projections into this kernel body —
    # the fixed launch + DMA cost dominates the ~2 MXU pushes at these shapes.


# ---- pure-JAX reference (mirrors the torch forward exactly) ---------------------
def geo_cross_attention_ref(q, k, v):
    Bq, Nq, _ = q.shape
    Nk = k.shape[1]
    qh = q.reshape(Bq, Nq, NUM_HEADS, C // NUM_HEADS).transpose(0, 2, 1, 3)
    kh = k.reshape(Bq, Nk, NUM_HEADS, C // NUM_HEADS).transpose(0, 2, 1, 3)
    vh = v.reshape(Bq, Nk, NUM_HEADS, -1).transpose(0, 2, 1, 3)
    attn = jnp.einsum("bhnd,bhmd->bhnm", qh, kh) * SCALE
    attn = jax.nn.softmax(attn, axis=-1)
    x = jnp.einsum("bhnm,bhmd->bhnd", attn, vh)
    return x.transpose(0, 2, 1, 3).reshape(Bq, Nq, DV)


if __name__ == "__main__":
    key = jax.random.PRNGKey(0)
    kq, kk, kv = jax.random.split(key, 3)
    q = jax.random.normal(kq, (B, N, C), jnp.float32)
    k = jax.random.normal(kk, (B, NK, C), jnp.float32)
    v = jax.random.normal(kv, (B, NK, DV), jnp.float32)

    out = jax.block_until_ready(geo_cross_attention(q, k, v))
    ref = geo_cross_attention_ref(q, k, v)

    assert out.shape == (B, N, DV)
    max_err = float(jnp.max(jnp.abs(out - ref)))
    assert jnp.allclose(out, ref, atol=1e-3, rtol=1e-3), max_err
    print("KERNEL_OK")
</pallas_src>

<mosaic_0001>
module attributes {stable_mosaic.version = 11 : i64} {
  func.func @geo_cross_attention_kernel(%arg0: memref<2x8x32xf32, #tpu.memory_space<vmem>>, %arg1: memref<2x16x32xf32, #tpu.memory_space<vmem>>, %arg2: memref<2x16x3xf32, #tpu.memory_space<vmem>>, %arg3: memref<2x8x3xf32, #tpu.memory_space<vmem>>) attributes {dimension_semantics = [], scalar_prefetch = 0 : i64, scratch_operands = 0 : i64, tpu.core_type = #tpu.core_type<tc>} {
    %c0 = arith.constant 0 : index
    %c0_0 = arith.constant 0 : index
    %c0_1 = arith.constant 0 : index
    %0 = vector.load %arg0[%c0, %c0_0, %c0_1] : memref<2x8x32xf32, #tpu.memory_space<vmem>>, vector<2x8x32xf32>
    %c0_2 = arith.constant 0 : index
    %c0_3 = arith.constant 0 : index
    %c0_4 = arith.constant 0 : index
    %1 = vector.load %arg1[%c0_2, %c0_3, %c0_4] : memref<2x16x32xf32, #tpu.memory_space<vmem>>, vector<2x16x32xf32>
    %c0_5 = arith.constant 0 : index
    %c0_6 = arith.constant 0 : index
    %c0_7 = arith.constant 0 : index
    %2 = vector.load %arg2[%c0_5, %c0_6, %c0_7] : memref<2x16x3xf32, #tpu.memory_space<vmem>>, vector<2x16x3xf32>
    "tpu.trace_start"() <{level = 10 : i32, message = "bnc,bmc->bnm"}> : () -> ()
    %cst = arith.constant dense<0.000000e+00> : vector<2x8x16xf32>
    %3 = tpu.matmul %0, %1, %cst {dimension_numbers = #tpu.dot_dimension_numbers<[2], [2], [1], [1], [0, 0, 0, 1, 1, 1], [0], [0]>} : vector<2x8x32xf32>, vector<2x16x32xf32>, vector<2x8x16xf32> -> vector<2x8x16xf32>
    "tpu.trace_stop"() : () -> ()
    %cst_8 = arith.constant dense<0xFF800000> : vector<2x8xf32>
    %4 = vector.multi_reduction <maximumf>, %3, %cst_8 [2] : vector<2x8x16xf32> to vector<2x8xf32>
    %5 = vector.shape_cast %4 : vector<2x8xf32> to vector<2x8x1xf32>
    %6 = vector.broadcast %5 : vector<2x8x1xf32> to vector<2x8x16xf32>
    %7 = arith.subf %3, %6 : vector<2x8x16xf32>
    %8 = math.exp %7 : vector<2x8x16xf32>
    %cst_9 = arith.constant dense<0.000000e+00> : vector<2x8xf32>
    %9 = vector.multi_reduction <add>, %8, %cst_9 [2] : vector<2x8x16xf32> to vector<2x8xf32>
    %10 = vector.shape_cast %9 : vector<2x8xf32> to vector<2x8x1xf32>
    %11 = vector.broadcast %10 : vector<2x8x1xf32> to vector<2x8x16xf32>
    %12 = arith.divf %8, %11 : vector<2x8x16xf32>
    "tpu.trace_start"() <{level = 10 : i32, message = "bnm,bmd->bnd"}> : () -> ()
    %cst_10 = arith.constant dense<0.000000e+00> : vector<2x8x3xf32>
    %13 = tpu.matmul %12, %2, %cst_10 {dimension_numbers = #tpu.dot_dimension_numbers<[2], [1], [1], [2], [0, 0, 0, 1, 1, 2], [0], [0]>} : vector<2x8x16xf32>, vector<2x16x3xf32>, vector<2x8x3xf32> -> vector<2x8x3xf32>
    "tpu.trace_stop"() : () -> ()
    %c0_11 = arith.constant 0 : index
    %c0_12 = arith.constant 0 : index
    %c0_13 = arith.constant 0 : index
    %14 = vector.load %arg3[%c0_11, %c0_12, %c0_13] : memref<2x8x3xf32, #tpu.memory_space<vmem>>, vector<2x8x3xf32>
    tpu.vector_store %arg3[%c0_11, %c0_12, %c0_13], %13 {strides = array<i32>} : memref<2x8x3xf32, #tpu.memory_space<vmem>>, vector<2x8x3xf32>,
    return
  }
}

</mosaic_0001>

<bundles_post_ra>
// kernel: tpu_custom_call.1
= control target key start
LH: loop header
LB: loop body
LE: loop exit
PB: predicated region body
PF: predicated region fallthrough
CT: control target
= control target key end

     0   :  { %8 = vsyncpa [#allocation3], 0  ;;  %s474_s12 = smov [#allocation2]   ;;  %s552_s0 = inlined_call_operand.hbm [shape: f32[2,8,32], index: 0, kind: input, shape index: {}]   ;;  %s553_s1 = inlined_call_operand.vmem [shape: f32[2,16,32], index: 1, kind: input, shape index: {}]   ;;  %s554_s2 = inlined_call_operand.vmem [shape: f32[2,16,3], index: 2, kind: input, shape index: {}]   ;;  %s555_s3 = inlined_call_operand.vmem [shape: f32[2,8,3], index: 3, kind: output, shape index: {}]  }
   0x1   :  { %s14_s13 = sshll.u32 %s474_s12, 4  ;;  %s450_s16 = scalar_lea.hbm %s552_s0, 256  ;;  %s15_s13 = int_to_ptr.vmem [resolvable:$true] %s14_s13 }
   0x2   :  { %p451_p0 = scmp.ne.s32.totalorder %s552_s0, %s450_s16  ;;  %p454_p1 = scmp.lt.u32.totalorder %s450_s16, %s552_s0 }
   0x4   :  { %p456_p2 = pnand %p454_p1, %p451_p0 }
   0x6   :  { %459 = shalt.err (!%p456_p2)
}
   0x7   :  { %s460_s21 = scalar_lea.vmem %s15_s13, 256  ;;  %p465_p4 = scmp.lt.s32.totalorder %s15_s13, %s15_s13 }
   0x8   :  { %p461_p3 = scmp.ne.s32.totalorder %s15_s13, %s460_s21  ;;  %p466_p5 = scmp.lt.s32.totalorder %s460_s21, %s460_s21 }
   0xa   :  { %p467_p6 = por %p466_p5, %p465_p4 }
   0xc   :  { %p468_p7 = pnand %p467_p6, %p461_p3 }
   0xe   :  { %471 = shalt.err (!%p468_p7)
}
   0xf   :  { %s475_s22 = smov 128   ;;  %s476_s23 = smov 8  }
  0x10   :  { %20 = dma.hbm_to_vmem [thread:$0]  %s552_s0, 256, %s15_s13, [#allocation3], %s475_s22, %s475_s22, %s476_s23  }
  0x11   :  { %472 = dma.done.wait [#allocation3], 256  }
  0x12   :  { %473 = vsyncadd [#allocation3], 4294967040  ;;  %v477_v0 = vmov 0.0|0.0   ;;  %vm478_vm0 = vmmov 0   ;;  %v479_v1 = vmov 0.0   ;;  %vm38_vm1 = vcmask 261120  }
  0x13   :  { %422 = vmatprep.subr.bf16.mxu0 %v477_v0  ;;  %426 = vmatprep.subr.bf16.mxu1 %v477_v0  ;;  %vm424_vm2 = vmpackc.low %vm38_vm1, %vm38_vm1  ;;  %v30_v2 = vld [vmem:[%s553_s1] sm:$0xff]  ;;  %v31_v3 = vld [vmem:[%s553_s1 + $0x8] sm:$0xff]  ;;  %vm197_vm3 = vcmask 130048   ;;  %vm366_vm4 = vcmask 23552  }
  0x14   :  { %398 = vmatprep.mubr.msk.f32.mxu0 %vm478_vm0, %v479_v1  ;;  %405 = vmatprep.mubr.msk.f32.mxu1 %vm478_vm0, %v479_v1  ;;  %v32_v4 = vld [vmem:[%s553_s1 + $0x10] sm:$0xff]  ;;  %v423_v5 = vpack.c.bf16 %v31_v3, %v30_v2  ;;  %v33_v6 = vld [vmem:[%s553_s1 + $0x18] sm:$0xff]  ;;  %v28_v8 = vld [vmem:[#allocation2] sm:$0xff] }
  0x15   :  { %v427_v7 = vpack.c.bf16 %v33_v6, %v32_v4  ;;  %v29_v9 = vld [vmem:[#allocation2 + $0x8] sm:$0xff]  ;;  %v34_v26 = vld [vmem:[%s554_s2] sm:$0xff]  ;;  %v36_v29 = vld [vmem:[%s554_s2 + $0x10] sm:$0xff] }
  0x16   :  { %425 = vmatpush3.bf16.xpose.msk.msra.mxu0 %vm424_vm2, %v423_v5  ;;  %v35_v27 = vld [vmem:[%s554_s2 + $0x8] sm:$0xff]  ;;  %v37_v30 = vld [vmem:[%s554_s2 + $0x18] sm:$0xff] }
  0x17   :  { %429 = vmatpush3.bf16.xpose.msk.msra.mxu1 %vm424_vm2, %v427_v7  ;;  %430 = vmatprep.subr.bf16.mxu0 %v477_v0  ;;  %v431_v28 = vpack.c.bf16 %v35_v27, %v34_v26  ;;  %v434_v31 = vpack.c.bf16 %v37_v30, %v36_v29 }
  0x18   :  { %433 = vmatprep.subr.bf16.mxu1 %v477_v0 }
  0x1d   :  { %399 = vmatmul.mubr.msk.f32.vlgmr.msra.gmra.mrb[0].mxu0 %vm38_vm1, %v28_v8 }
  0x1e   :  { %406 = vmatmul.mubr.msk.f32.vlgmr.msra.gmra.mrb[0].mxu1 %vm38_vm1, %v29_v9  ;;  %412 = vmatprep.mubr.msk.f32.mxu0 %vm478_vm0, %v479_v1 }
  0x1f   :  { %419 = vmatprep.mubr.msk.f32.mxu1 %vm478_vm0, %v479_v1  ;;  %432 = vmatpush3.bf16.msra.mxu0 %v431_v28 }
  0x20   :  { %435 = vmatpush3.bf16.msra.mxu1 %v434_v31 }
  0xf0   :  { %v114_v10 = vpop.f32.mrb[0].mxu0 }
  0xf1   :  { %v400_v11 = vpop.f32.mrb[1].mxu0  ;;  %v198_v12 = vsel %vm197_vm3, %v114_v10, -inf  ;;  %v193_v13 = vpop.f32.mrb[0].mxu1 }
  0xf2   :  { %199 = vmax.xlane.f32.xlu0 %v198_v12  ;;  %v407_v14 = vpop.f32.mrb[1].mxu1  ;;  %v201_v15 = vsel %vm197_vm3, %v193_v13, -inf }
  0xf6   :  { %202 = vmax.xlane.f32.xlu0 %v201_v15 }
 0x17f   :  { %v200_v16 = vpop.xlane.xlu0 %199 }
 0x180   :  { %v204_v17 = vsub.f32 %v114_v10, %v200_v16 }
 0x182   :  { %v206_v18 = vmul.f32 1.442695, %v204_v17 }
 0x183   :  { %v203_v19 = vpop.xlane.xlu0 %202 }
 0x184   :  { %442 = vpow2.f32 %v206_v18  ;;  %v205_v20 = vsub.f32 %v193_v13, %v203_v19 }
 0x186   :  { %v208_v21 = vmul.f32 1.442695, %v205_v20 }
 0x188   :  { %444 = vpow2.f32 %v208_v21 }
 0x18e   :  { %v443_v22 = vpop.eup %442 }
 0x18f   :  { %v210_v23 = vsel %vm197_vm3, %v443_v22, 0.0 }
 0x190   :  { %211 = vadd.xlane.f32.xlu1 %v210_v23 }
 0x192   :  { %v445_v24 = vpop.eup %444 }
 0x193   :  { %v213_v25 = vsel %vm197_vm3, %v445_v24, 0.0 }
 0x194   :  { %214 = vadd.xlane.f32.xlu1 %v213_v25 }
 0x21d   :  { %v212_v32 = vpop.xlane.xlu1 %211 }
 0x21e   :  { %446 = vrcp.f32 %v212_v32 }
 0x221   :  { %v215_v33 = vpop.xlane.xlu1 %214 }
 0x222   :  { %448 = vrcp.f32 %v215_v33 }
 0x228   :  { %v447_v34 = vpop.eup %446 }
 0x229   :  { %v217_v35 = vmul.f32 %v447_v34, %v443_v22 }
 0x22b   :  { %413 = vmatmul.mubr.msk.f32.vlgmr.msra.gmra.mrb[2].mxu0 %vm197_vm3, %v217_v35 }
 0x22c   :  { %v449_v36 = vpop.eup %448 }
 0x22d   :  { %v219_v37 = vmul.f32 %v449_v36, %v445_v24 }
 0x22f   :  { %420 = vmatmul.mubr.msk.f32.vlgmr.msra.gmra.mrb[2].mxu1 %vm197_vm3, %v219_v37 }
 0x2fe   :  { %v289_v38 = vpop.f32.mrb[2].mxu0 }
 0x2ff   :  { %367 = vst.msk [vmem:[%s555_s3] sm:$0xff] %vm366_vm4, %v289_v38  ;;  %v414_v39 = vpop.f32.mrb[3].mxu0 }
 0x302   :  { %v362_v40 = vpop.f32.mrb[2].mxu1 }
 0x303   :  { %368 = vst.msk [vmem:[%s555_s3 + $0x8] sm:$0xff] %vm366_vm4, %v362_v40  ;;  %v421_v41 = vpop.f32.mrb[3].mxu1 }
 0x304   :  { %373 = vsyncpa [#allocation3], 1 }

</bundles_post_ra>
